<compile_context>
chip_gen: v5e
topology: v5e:2x2
jax: 0.10.0
libtpu: 0.0.40
codegen_flags: <defaults>
</compile_context>

<pallas_src>
import math
import functools

import jax
import jax.numpy as jnp
from jax.experimental import pallas as pl
from jax.experimental.pallas import tpu as pltpu


_VMEM_LIMIT = 48 * 1024 * 1024  # > default scoped (16/32 MiB), < v7x physical (64 MiB)


def _pick_tile(n, target):
    """Largest tile <= target that divides n and satisfies the sublane rule
    (divisible by 8, or equal to the full dimension)."""
    t = min(n, target)
    while t > 1:
        if n % t == 0 and (t % 8 == 0 or t == n):
            return t
        t -= 1
    return n  # full dimension is always legal


# ---------------------------------------------------------------------------
# Packed linear (matmul + bias) kernel: lane-dense projections on the MXU.
# ---------------------------------------------------------------------------
def _linear_kernel(x_ref, w_ref, b_ref, o_ref):
    o_ref[...] = (jnp.dot(x_ref[...], w_ref[...],
                          preferred_element_type=jnp.float32)
                  + b_ref[...]).astype(o_ref.dtype)


def linear_pallas(x2d, w, b, *, row_tile=256):
    rows, d_in = x2d.shape
    d_out = w.shape[1]
    tr = _pick_tile(rows, row_tile)
    b2 = b.reshape(1, d_out)
    return pl.pallas_call(
        _linear_kernel,
        out_shape=jax.ShapeDtypeStruct((rows, d_out), x2d.dtype),
        grid=(rows // tr,),
        in_specs=[
            pl.BlockSpec((tr, d_in), lambda i: (i, 0)),
            pl.BlockSpec((d_in, d_out), lambda i: (0, 0)),   # weight stays VMEM-resident
            pl.BlockSpec((1, d_out), lambda i: (0, 0)),
        ],
        out_specs=pl.BlockSpec((tr, d_out), lambda i: (i, 0)),
        compiler_params=pltpu.CompilerParams(
            dimension_semantics=("parallel",),
            vmem_limit_bytes=_VMEM_LIMIT),
    )(x2d, w, b2)


# ---------------------------------------------------------------------------
# Flash-style attention core: grid (B, h, q-tiles, kv-tiles), kv innermost.
# ---------------------------------------------------------------------------
def _flash_attn_kernel(q_ref, k_ref, v_ref, o_ref, m_scr, l_scr, acc_scr):
    ki = pl.program_id(3)

    @pl.when(ki == 0)
    def _():
        m_scr[...] = jnp.full_like(m_scr, -jnp.inf)
        l_scr[...] = jnp.zeros_like(l_scr)
        acc_scr[...] = jnp.zeros_like(acc_scr)

    q = q_ref[...]                       # (tq, d_k); 1/sqrt(d_k) already folded in
    k = k_ref[...]                       # (tk, d_k)
    v = v_ref[...]                       # (tk, d_v)

    s = jnp.einsum('qd,kd->qk', q, k,
                   preferred_element_type=jnp.float32)          # (tq, tk)
    m_prev = m_scr[...]
    m_new = jnp.maximum(m_prev, jnp.max(s, axis=-1, keepdims=True))
    alpha = jnp.exp(m_prev - m_new)
    p = jnp.exp(s - m_new)
    l_scr[...] = alpha * l_scr[...] + jnp.sum(p, axis=-1, keepdims=True)
    acc_scr[...] = alpha * acc_scr[...] + jnp.dot(
        p.astype(v.dtype), v, preferred_element_type=jnp.float32)
    m_scr[...] = m_new

    @pl.when(ki == pl.num_programs(3) - 1)
    def _():
        o_ref[...] = (acc_scr[...] *
                      pl.reciprocal(l_scr[...], approx=True)).astype(o_ref.dtype)


def _attention_pallas(q_h, k_h, v_h, *, q_tile=256, kv_tile=512):
    B, h, L_dec, d_k = q_h.shape
    L_enc, d_v = k_h.shape[2], v_h.shape[3]
    tq = _pick_tile(L_dec, q_tile)
    tk = _pick_tile(L_enc, kv_tile)
    grid = (B, h, L_dec // tq, L_enc // tk)

    return pl.pallas_call(
        _flash_attn_kernel,
        out_shape=jax.ShapeDtypeStruct((B, h, L_dec, d_v), q_h.dtype),
        grid=grid,
        in_specs=[
            pl.BlockSpec((None, None, tq, d_k), lambda b, hh, qi, ki: (b, hh, qi, 0)),
            pl.BlockSpec((None, None, tk, d_k), lambda b, hh, qi, ki: (b, hh, ki, 0)),
            pl.BlockSpec((None, None, tk, d_v), lambda b, hh, qi, ki: (b, hh, ki, 0)),
        ],
        out_specs=pl.BlockSpec((None, None, tq, d_v),
                               lambda b, hh, qi, ki: (b, hh, qi, 0)),
        scratch_shapes=[
            pltpu.VMEM((tq, 1), jnp.float32),      # running max m
            pltpu.VMEM((tq, 1), jnp.float32),      # running denom l
            pltpu.VMEM((tq, d_v), jnp.float32),    # running numerator acc
        ],
        compiler_params=pltpu.CompilerParams(
            dimension_semantics=("parallel", "parallel", "parallel", "arbitrary"),
            vmem_limit_bytes=_VMEM_LIMIT),
    )(q_h, k_h, v_h)


# ---------------------------------------------------------------------------
# Full CrossAttention forward.
# ---------------------------------------------------------------------------
def cross_attention_pallas(x_encoder, x_decoder, params, *, h, d_k, d_v,
                           q_tile=256, kv_tile=512):
    """x_encoder: (B, L_enc, d_model), x_decoder: (B, L_dec, d_model)."""
    B, L_enc, d_model = x_encoder.shape
    _, L_dec, _ = x_decoder.shape
    dt = x_decoder.dtype

    # Weight prep (once, outside the kernels): fold the 1/sqrt(d_k) scale into
    # W_Q / b_Q, fuse K and V into a single pass over the encoder activations,
    # and cast weights to the activation dtype (bf16-ready MXU operands).
    scale = 1.0 / math.sqrt(d_k)
    wq = (params["wq"] * scale).astype(dt)
    bq = (params["bq"] * scale).astype(dt)
    wkv = jnp.concatenate([params["wk"], params["wv"]], axis=1).astype(dt)
    bkv = jnp.concatenate([params["bk"], params["bv"]], axis=0).astype(dt)
    wo = params["wo"].astype(dt)
    bo = params["bo"].astype(dt)

    # Packed, lane-dense projections (Pallas matmul kernel). K/V computed ONCE.
    q_packed = linear_pallas(x_decoder.reshape(B * L_dec, d_model), wq, bq)
    kv_packed = linear_pallas(x_encoder.reshape(B * L_enc, d_model), wkv, bkv)

    # Head split: pure layout plumbing, done once outside the kernels.
    q_h = q_packed.reshape(B, L_dec, h, d_k).transpose(0, 2, 1, 3)
    k_h = kv_packed[:, : h * d_k].reshape(B, L_enc, h, d_k).transpose(0, 2, 1, 3)
    v_h = kv_packed[:, h * d_k:].reshape(B, L_enc, h, d_v).transpose(0, 2, 1, 3)

    # Flash attention, streaming over L_enc chunks.
    ctx_h = _attention_pallas(q_h, k_h, v_h, q_tile=q_tile, kv_tile=kv_tile)

    # Output projection: one h*d_v-deep, lane-dense matmul (== concat @ W_O).
    ctx_packed = ctx_h.transpose(0, 2, 1, 3).reshape(B * L_dec, h * d_v)
    out = linear_pallas(ctx_packed, wo, bo)
    return out.reshape(B, L_dec, d_model)


# ---------------------------------------------------------------------------
# Pure-JAX reference mirroring the PyTorch CrossAttention.forward.
# ---------------------------------------------------------------------------
def cross_attention_ref(x_encoder, x_decoder, params, *, h, d_k, d_v):
    B, L_dec, d_model = x_decoder.shape
    L_enc = x_encoder.shape[1]
    Q = (x_decoder @ params["wq"] + params["bq"]).reshape(B, L_dec, h, d_k).transpose(0, 2, 1, 3)
    K = (x_encoder @ params["wk"] + params["bk"]).reshape(B, L_enc, h, d_k).transpose(0, 2, 1, 3)
    V = (x_encoder @ params["wv"] + params["bv"]).reshape(B, L_enc, h, d_v).transpose(0, 2, 1, 3)
    scores = jnp.einsum("bhqd,bhkd->bhqk", Q, K) / math.sqrt(d_k)
    A = jax.nn.softmax(scores, axis=-1)
    out = jnp.einsum("bhqk,bhkd->bhqd", A, V)
    out = out.transpose(0, 2, 1, 3).reshape(B, L_dec, h * d_v)
    return out @ params["wo"] + params["bo"]


def init_params(key, d_model, h, d_k, d_v):
    """Deterministic init matching nn.Linear shapes (weights stored transposed)."""
    ks = jax.random.split(key, 8)

    def lin(kw, kb, fan_in, fan_out):
        bound = 1.0 / math.sqrt(fan_in)
        w = jax.random.uniform(kw, (fan_in, fan_out), jnp.float32, -bound, bound)
        b = jax.random.uniform(kb, (fan_out,), jnp.float32, -bound, bound)
        return w, b

    wq, bq = lin(ks[0], ks[1], d_model, h * d_k)
    wk, bk = lin(ks[2], ks[3], d_model, h * d_k)
    wv, bv = lin(ks[4], ks[5], d_model, h * d_v)
    wo, bo = lin(ks[6], ks[7], h * d_v, d_model)
    return dict(wq=wq, bq=bq, wk=wk, bk=bk, wv=wv, bv=bv, wo=wo, bo=bo)


if __name__ == "__main__":
    # Small shapes consistent with the module: d_model=32, h=4 heads,
    # d_k = d_v = 8, batch=2, L_enc=8, L_dec=8.
    d_model, h = 32, 4
    d_k = d_model // h
    d_v = d_k
    B, L_enc, L_dec = 2, 8, 8

    key = jax.random.PRNGKey(0)
    k_enc, k_dec, k_par = jax.random.split(key, 3)

    x_encoder = jax.random.normal(k_enc, (B, L_enc, d_model), jnp.float32)
    x_decoder = jax.random.normal(k_dec, (B, L_dec, d_model), jnp.float32)
    params = init_params(k_par, d_model, h, d_k, d_v)

    fn = jax.jit(functools.partial(cross_attention_pallas, h=h, d_k=d_k, d_v=d_v))
    out = fn(x_encoder, x_decoder, params)
    out = jax.block_until_ready(out)

    ref = cross_attention_ref(x_encoder, x_decoder, params, h=h, d_k=d_k, d_v=d_v)
    assert out.shape == (B, L_dec, d_model)
    # pl.reciprocal(approx=True) in the softmax denominator introduces
    # ~1e-4-level relative error vs the exact divide.
    assert jnp.allclose(out, ref, atol=2e-3, rtol=2e-3), "mismatch vs JAX reference"

    print("KERNEL_OK")
</pallas_src>

<mosaic_0001>
module attributes {stable_mosaic.version = 11 : i64} {
  func.func @_linear_kernel(%arg0: i32, %arg1: memref<16x32xf32, #tpu.memory_space<vmem>>, %arg2: memref<32x64xf32, #tpu.memory_space<vmem>>, %arg3: memref<1x64xf32, #tpu.memory_space<vmem>>, %arg4: memref<16x64xf32, #tpu.memory_space<vmem>>) attributes {dimension_semantics = [#tpu.dimension_semantics<parallel>], iteration_bounds = array<i64: 1>, scalar_prefetch = 0 : i64, scratch_operands = 0 : i64, tpu.core_type = #tpu.core_type<tc>, window_params = [{transform_indices = @transform_0, window_bounds = array<i64: 16, 32>}, {pipeline_mode = #tpu.pipeline_mode<synchronous>, transform_indices = @transform_1, window_bounds = array<i64: 32, 64>}, {pipeline_mode = #tpu.pipeline_mode<synchronous>, transform_indices = @transform_2, window_bounds = array<i64: 1, 64>}, {transform_indices = @transform_3, window_bounds = array<i64: 16, 64>}]} {
    %c0 = arith.constant 0 : index
    %c0_0 = arith.constant 0 : index
    %0 = vector.load %arg1[%c0, %c0_0] : memref<16x32xf32, #tpu.memory_space<vmem>>, vector<16x32xf32>
    %c0_1 = arith.constant 0 : index
    %c0_2 = arith.constant 0 : index
    %1 = vector.load %arg2[%c0_1, %c0_2] : memref<32x64xf32, #tpu.memory_space<vmem>>, vector<32x64xf32>
    %cst = arith.constant dense<0.000000e+00> : vector<16x64xf32>
    %2 = tpu.matmul %0, %1, %cst {dimension_numbers = #tpu.dot_dimension_numbers<[1], [0], [0], [1], [0, 0, 1, 1], [], []>} : vector<16x32xf32>, vector<32x64xf32>, vector<16x64xf32> -> vector<16x64xf32>
    %c0_3 = arith.constant 0 : index
    %c0_4 = arith.constant 0 : index
    %3 = vector.load %arg3[%c0_3, %c0_4] : memref<1x64xf32, #tpu.memory_space<vmem>>, vector<1x64xf32>
    %4 = vector.broadcast %3 : vector<1x64xf32> to vector<16x64xf32>
    %5 = arith.addf %2, %4 : vector<16x64xf32>
    %c0_5 = arith.constant 0 : index
    %c0_6 = arith.constant 0 : index
    %6 = vector.load %arg4[%c0_5, %c0_6] : memref<16x64xf32, #tpu.memory_space<vmem>>, vector<16x64xf32>
    tpu.vector_store %arg4[%c0_5, %c0_6], %5 {strides = array<i32>} : memref<16x64xf32, #tpu.memory_space<vmem>>, vector<16x64xf32>,
    return
  }
  func.func @transform_0(%arg0: i32) -> (i32, i32) {
    %c0_i32 = arith.constant 0 : i32
    %c0_i32_0 = arith.constant 0 : i32
    return %arg0, %c0_i32 : i32, i32
  }
  func.func @transform_1(%arg0: i32) -> (i32, i32) {
    %c0_i32 = arith.constant 0 : i32
    %c0_i32_0 = arith.constant 0 : i32
    %c0_i32_1 = arith.constant 0 : i32
    return %c0_i32, %c0_i32_0 : i32, i32
  }
  func.func @transform_2(%arg0: i32) -> (i32, i32) {
    %c0_i32 = arith.constant 0 : i32
    %c0_i32_0 = arith.constant 0 : i32
    %c0_i32_1 = arith.constant 0 : i32
    return %c0_i32, %c0_i32_0 : i32, i32
  }
  func.func @transform_3(%arg0: i32) -> (i32, i32) {
    %c0_i32 = arith.constant 0 : i32
    %c0_i32_0 = arith.constant 0 : i32
    return %arg0, %c0_i32 : i32, i32
  }
}

module attributes {stable_mosaic.version = 11 : i64} {
  func.func @_linear_kernel(%arg0: i32, %arg1: memref<16x32xf32, #tpu.memory_space<vmem>>, %arg2: memref<32x32xf32, #tpu.memory_space<vmem>>, %arg3: memref<1x32xf32, #tpu.memory_space<vmem>>, %arg4: memref<16x32xf32, #tpu.memory_space<vmem>>) attributes {dimension_semantics = [#tpu.dimension_semantics<parallel>], iteration_bounds = array<i64: 1>, scalar_prefetch = 0 : i64, scratch_operands = 0 : i64, tpu.core_type = #tpu.core_type<tc>, window_params = [{transform_indices = @transform_0, window_bounds = array<i64: 16, 32>}, {pipeline_mode = #tpu.pipeline_mode<synchronous>, transform_indices = @transform_1, window_bounds = array<i64: 32, 32>}, {pipeline_mode = #tpu.pipeline_mode<synchronous>, transform_indices = @transform_2, window_bounds = array<i64: 1, 32>}, {transform_indices = @transform_3, window_bounds = array<i64: 16, 32>}]} {
    %c0 = arith.constant 0 : index
    %c0_0 = arith.constant 0 : index
    %0 = vector.load %arg1[%c0, %c0_0] : memref<16x32xf32, #tpu.memory_space<vmem>>, vector<16x32xf32>
    %c0_1 = arith.constant 0 : index
    %c0_2 = arith.constant 0 : index
    %1 = vector.load %arg2[%c0_1, %c0_2] : memref<32x32xf32, #tpu.memory_space<vmem>>, vector<32x32xf32>
    %cst = arith.constant dense<0.000000e+00> : vector<16x32xf32>
    %2 = tpu.matmul %0, %1, %cst {dimension_numbers = #tpu.dot_dimension_numbers<[1], [0], [0], [1], [0, 0, 1, 1], [], []>} : vector<16x32xf32>, vector<32x32xf32>, vector<16x32xf32> -> vector<16x32xf32>
    %c0_3 = arith.constant 0 : index
    %c0_4 = arith.constant 0 : index
    %3 = vector.load %arg3[%c0_3, %c0_4] : memref<1x32xf32, #tpu.memory_space<vmem>>, vector<1x32xf32>
    %4 = vector.broadcast %3 : vector<1x32xf32> to vector<16x32xf32>
    %5 = arith.addf %2, %4 : vector<16x32xf32>
    %c0_5 = arith.constant 0 : index
    %c0_6 = arith.constant 0 : index
    %6 = vector.load %arg4[%c0_5, %c0_6] : memref<16x32xf32, #tpu.memory_space<vmem>>, vector<16x32xf32>
    tpu.vector_store %arg4[%c0_5, %c0_6], %5 {strides = array<i32>} : memref<16x32xf32, #tpu.memory_space<vmem>>, vector<16x32xf32>,
    return
  }
  func.func @transform_0(%arg0: i32) -> (i32, i32) {
    %c0_i32 = arith.constant 0 : i32
    %c0_i32_0 = arith.constant 0 : i32
    return %arg0, %c0_i32 : i32, i32
  }
  func.func @transform_1(%arg0: i32) -> (i32, i32) {
    %c0_i32 = arith.constant 0 : i32
    %c0_i32_0 = arith.constant 0 : i32
    %c0_i32_1 = arith.constant 0 : i32
    return %c0_i32, %c0_i32_0 : i32, i32
  }
  func.func @transform_2(%arg0: i32) -> (i32, i32) {
    %c0_i32 = arith.constant 0 : i32
    %c0_i32_0 = arith.constant 0 : i32
    %c0_i32_1 = arith.constant 0 : i32
    return %c0_i32, %c0_i32_0 : i32, i32
  }
  func.func @transform_3(%arg0: i32) -> (i32, i32) {
    %c0_i32 = arith.constant 0 : i32
    %c0_i32_0 = arith.constant 0 : i32
    return %arg0, %c0_i32 : i32, i32
  }
}

module attributes {stable_mosaic.version = 11 : i64} {
  func.func @_flash_attn_kernel(%arg0: i32, %arg1: i32, %arg2: i32, %arg3: i32, %arg4: memref<1x1x8x8xf32, #tpu.memory_space<vmem>>, %arg5: memref<1x1x8x8xf32, #tpu.memory_space<vmem>>, %arg6: memref<1x1x8x8xf32, #tpu.memory_space<vmem>>, %arg7: memref<1x1x8x8xf32, #tpu.memory_space<vmem>>, %arg8: memref<8x1xf32, #tpu.memory_space<vmem>>, %arg9: memref<8x1xf32, #tpu.memory_space<vmem>>, %arg10: memref<8x8xf32, #tpu.memory_space<vmem>>) attributes {dimension_semantics = [#tpu.dimension_semantics<parallel>, #tpu.dimension_semantics<parallel>, #tpu.dimension_semantics<parallel>, #tpu.dimension_semantics<arbitrary>], iteration_bounds = array<i64: 2, 4, 1, 1>, scalar_prefetch = 0 : i64, scratch_operands = 3 : i64, tpu.core_type = #tpu.core_type<tc>, window_params = [{transform_indices = @transform_0, window_bounds = array<i64: 1, 1, 8, 8>}, {transform_indices = @transform_1, window_bounds = array<i64: 1, 1, 8, 8>}, {transform_indices = @transform_2, window_bounds = array<i64: 1, 1, 8, 8>}, {transform_indices = @transform_3, window_bounds = array<i64: 1, 1, 8, 8>}]} {
    %c0_i32 = arith.constant 0 : i32
    %0 = arith.cmpi eq, %arg3, %c0_i32 : i32
    %1 = arith.extui %0 : i1 to i32
    %c0_i32_0 = arith.constant 0 : i32
    %2 = arith.cmpi ne, %1, %c0_i32_0 : i32
    scf.if %2 {
      %cst_29 = arith.constant 0xFF800000 : f32
      %35 = vector.broadcast %cst_29 : f32 to vector<8x1xf32>
      %c0_30 = arith.constant 0 : index
      %c0_31 = arith.constant 0 : index
      %36 = vector.load %arg8[%c0_30, %c0_31] : memref<8x1xf32, #tpu.memory_space<vmem>>, vector<8x1xf32>
      tpu.vector_store %arg8[%c0_30, %c0_31], %35 {strides = array<i32>} : memref<8x1xf32, #tpu.memory_space<vmem>>, vector<8x1xf32>,
      %cst_32 = arith.constant 0.000000e+00 : f32
      %37 = vector.broadcast %cst_32 : f32 to vector<8x1xf32>
      %c0_33 = arith.constant 0 : index
      %c0_34 = arith.constant 0 : index
      %38 = vector.load %arg9[%c0_33, %c0_34] : memref<8x1xf32, #tpu.memory_space<vmem>>, vector<8x1xf32>
      tpu.vector_store %arg9[%c0_33, %c0_34], %37 {strides = array<i32>} : memref<8x1xf32, #tpu.memory_space<vmem>>, vector<8x1xf32>,
      %cst_35 = arith.constant 0.000000e+00 : f32
      %39 = vector.broadcast %cst_35 : f32 to vector<8x8xf32>
      %c0_36 = arith.constant 0 : index
      %c0_37 = arith.constant 0 : index
      %40 = vector.load %arg10[%c0_36, %c0_37] : memref<8x8xf32, #tpu.memory_space<vmem>>, vector<8x8xf32>
      tpu.vector_store %arg10[%c0_36, %c0_37], %39 {strides = array<i32>} : memref<8x8xf32, #tpu.memory_space<vmem>>, vector<8x8xf32>,
    } else {
    }
    %c0 = arith.constant 0 : index
    %c0_1 = arith.constant 0 : index
    %c0_2 = arith.constant 0 : index
    %c0_3 = arith.constant 0 : index
    %3 = vector.load %arg4[%c0, %c0_1, %c0_2, %c0_3] : memref<1x1x8x8xf32, #tpu.memory_space<vmem>>, vector<1x1x8x8xf32>
    %4 = vector.shape_cast %3 : vector<1x1x8x8xf32> to vector<8x8xf32>
    %c0_4 = arith.constant 0 : index
    %c0_5 = arith.constant 0 : index
    %c0_6 = arith.constant 0 : index
    %c0_7 = arith.constant 0 : index
    %5 = vector.load %arg5[%c0_4, %c0_5, %c0_6, %c0_7] : memref<1x1x8x8xf32, #tpu.memory_space<vmem>>, vector<1x1x8x8xf32>
    %6 = vector.shape_cast %5 : vector<1x1x8x8xf32> to vector<8x8xf32>
    %c0_8 = arith.constant 0 : index
    %c0_9 = arith.constant 0 : index
    %c0_10 = arith.constant 0 : index
    %c0_11 = arith.constant 0 : index
    %7 = vector.load %arg6[%c0_8, %c0_9, %c0_10, %c0_11] : memref<1x1x8x8xf32, #tpu.memory_space<vmem>>, vector<1x1x8x8xf32>
    %8 = vector.shape_cast %7 : vector<1x1x8x8xf32> to vector<8x8xf32>
    "tpu.trace_start"() <{level = 10 : i32, message = "qd,kd->qk"}> : () -> ()
    %cst = arith.constant dense<0.000000e+00> : vector<8x8xf32>
    %9 = tpu.matmul %4, %6, %cst {dimension_numbers = #tpu.dot_dimension_numbers<[1], [1], [0], [0], [0, 0, 1, 0], [], []>} : vector<8x8xf32>, vector<8x8xf32>, vector<8x8xf32> -> vector<8x8xf32>
    "tpu.trace_stop"() : () -> ()
    %c0_12 = arith.constant 0 : index
    %c0_13 = arith.constant 0 : index
    %10 = vector.load %arg8[%c0_12, %c0_13] : memref<8x1xf32, #tpu.memory_space<vmem>>, vector<8x1xf32>
    %cst_14 = arith.constant dense<0xFF800000> : vector<8xf32>
    %11 = vector.multi_reduction <maximumf>, %9, %cst_14 [1] : vector<8x8xf32> to vector<8xf32>
    %12 = vector.shape_cast %11 : vector<8xf32> to vector<8x1xf32>
    %13 = arith.maximumf %10, %12 : vector<8x1xf32>
    %14 = arith.subf %10, %13 : vector<8x1xf32>
    %15 = math.exp %14 : vector<8x1xf32>
    %16 = vector.broadcast %13 : vector<8x1xf32> to vector<8x8xf32>
    %17 = arith.subf %9, %16 : vector<8x8xf32>
    %18 = math.exp %17 : vector<8x8xf32>
    %c0_15 = arith.constant 0 : index
    %c0_16 = arith.constant 0 : index
    %19 = vector.load %arg9[%c0_15, %c0_16] : memref<8x1xf32, #tpu.memory_space<vmem>>, vector<8x1xf32>
    %20 = arith.mulf %15, %19 : vector<8x1xf32>
    %cst_17 = arith.constant dense<0.000000e+00> : vector<8xf32>
    %21 = vector.multi_reduction <add>, %18, %cst_17 [1] : vector<8x8xf32> to vector<8xf32>
    %22 = vector.shape_cast %21 : vector<8xf32> to vector<8x1xf32>
    %23 = arith.addf %20, %22 : vector<8x1xf32>
    %c0_18 = arith.constant 0 : index
    %c0_19 = arith.constant 0 : index
    %24 = vector.load %arg9[%c0_18, %c0_19] : memref<8x1xf32, #tpu.memory_space<vmem>>, vector<8x1xf32>
    tpu.vector_store %arg9[%c0_18, %c0_19], %23 {strides = array<i32>} : memref<8x1xf32, #tpu.memory_space<vmem>>, vector<8x1xf32>,
    %c0_20 = arith.constant 0 : index
    %c0_21 = arith.constant 0 : index
    %25 = vector.load %arg10[%c0_20, %c0_21] : memref<8x8xf32, #tpu.memory_space<vmem>>, vector<8x8xf32>
    %26 = vector.broadcast %15 : vector<8x1xf32> to vector<8x8xf32>
    %27 = arith.mulf %26, %25 : vector<8x8xf32>
    %cst_22 = arith.constant dense<0.000000e+00> : vector<8x8xf32>
    %28 = tpu.matmul %18, %8, %cst_22 {dimension_numbers = #tpu.dot_dimension_numbers<[1], [0], [0], [1], [0, 0, 1, 1], [], []>} : vector<8x8xf32>, vector<8x8xf32>, vector<8x8xf32> -> vector<8x8xf32>
    %29 = arith.addf %27, %28 : vector<8x8xf32>
    %c0_23 = arith.constant 0 : index
    %c0_24 = arith.constant 0 : index
    %30 = vector.load %arg10[%c0_23, %c0_24] : memref<8x8xf32, #tpu.memory_space<vmem>>, vector<8x8xf32>
    tpu.vector_store %arg10[%c0_23, %c0_24], %29 {strides = array<i32>} : memref<8x8xf32, #tpu.memory_space<vmem>>, vector<8x8xf32>,
    %c0_25 = arith.constant 0 : index
    %c0_26 = arith.constant 0 : index
    %31 = vector.load %arg8[%c0_25, %c0_26] : memref<8x1xf32, #tpu.memory_space<vmem>>, vector<8x1xf32>
    tpu.vector_store %arg8[%c0_25, %c0_26], %13 {strides = array<i32>} : memref<8x1xf32, #tpu.memory_space<vmem>>, vector<8x1xf32>,
    %c0_i32_27 = arith.constant 0 : i32
    %32 = arith.cmpi eq, %arg3, %c0_i32_27 : i32
    %33 = arith.extui %32 : i1 to i32
    %c0_i32_28 = arith.constant 0 : i32
    %34 = arith.cmpi ne, %33, %c0_i32_28 : i32
    scf.if %34 {
      %c0_29 = arith.constant 0 : index
      %c0_30 = arith.constant 0 : index
      %35 = vector.load %arg10[%c0_29, %c0_30] : memref<8x8xf32, #tpu.memory_space<vmem>>, vector<8x8xf32>
      %c0_31 = arith.constant 0 : index
      %c0_32 = arith.constant 0 : index
      %36 = vector.load %arg9[%c0_31, %c0_32] : memref<8x1xf32, #tpu.memory_space<vmem>>, vector<8x1xf32>
      %37 = tpu.reciprocal %36 {approx = true} : vector<8x1xf32> -> vector<8x1xf32>
      %38 = vector.broadcast %37 : vector<8x1xf32> to vector<8x8xf32>
      %39 = arith.mulf %35, %38 : vector<8x8xf32>
      %c0_33 = arith.constant 0 : index
      %c0_34 = arith.constant 0 : index
      %c0_35 = arith.constant 0 : index
      %c0_36 = arith.constant 0 : index
      %40 = vector.load %arg7[%c0_33, %c0_34, %c0_35, %c0_36] : memref<1x1x8x8xf32, #tpu.memory_space<vmem>>, vector<1x1x8x8xf32>
      %41 = vector.shape_cast %40 : vector<1x1x8x8xf32> to vector<8x8xf32>
      %42 = vector.shape_cast %39 : vector<8x8xf32> to vector<1x1x8x8xf32>
      tpu.vector_store %arg7[%c0_33, %c0_34, %c0_35, %c0_36], %42 {strides = array<i32>} : memref<1x1x8x8xf32, #tpu.memory_space<vmem>>, vector<1x1x8x8xf32>,
    } else {
    }
    return
  }
  func.func @transform_0(%arg0: i32, %arg1: i32, %arg2: i32, %arg3: i32) -> (i32, i32, i32, i32) {
    %c0_i32 = arith.constant 0 : i32
    %c0_i32_0 = arith.constant 0 : i32
    return %arg0, %arg1, %arg2, %c0_i32 : i32, i32, i32, i32
  }
  func.func @transform_1(%arg0: i32, %arg1: i32, %arg2: i32, %arg3: i32) -> (i32, i32, i32, i32) {
    %c0_i32 = arith.constant 0 : i32
    %c0_i32_0 = arith.constant 0 : i32
    return %arg0, %arg1, %arg3, %c0_i32 : i32, i32, i32, i32
  }
  func.func @transform_2(%arg0: i32, %arg1: i32, %arg2: i32, %arg3: i32) -> (i32, i32, i32, i32) {
    %c0_i32 = arith.constant 0 : i32
    %c0_i32_0 = arith.constant 0 : i32
    return %arg0, %arg1, %arg3, %c0_i32 : i32, i32, i32, i32
  }
  func.func @transform_3(%arg0: i32, %arg1: i32, %arg2: i32, %arg3: i32) -> (i32, i32, i32, i32) {
    %c0_i32 = arith.constant 0 : i32
    %c0_i32_0 = arith.constant 0 : i32
    return %arg0, %arg1, %arg2, %c0_i32 : i32, i32, i32, i32
  }
}

module attributes {stable_mosaic.version = 11 : i64} {
  func.func @_linear_kernel(%arg0: i32, %arg1: memref<16x32xf32, #tpu.memory_space<vmem>>, %arg2: memref<32x32xf32, #tpu.memory_space<vmem>>, %arg3: memref<1x32xf32, #tpu.memory_space<vmem>>, %arg4: memref<16x32xf32, #tpu.memory_space<vmem>>) attributes {dimension_semantics = [#tpu.dimension_semantics<parallel>], iteration_bounds = array<i64: 1>, scalar_prefetch = 0 : i64, scratch_operands = 0 : i64, tpu.core_type = #tpu.core_type<tc>, window_params = [{transform_indices = @transform_0, window_bounds = array<i64: 16, 32>}, {pipeline_mode = #tpu.pipeline_mode<synchronous>, transform_indices = @transform_1, window_bounds = array<i64: 32, 32>}, {pipeline_mode = #tpu.pipeline_mode<synchronous>, transform_indices = @transform_2, window_bounds = array<i64: 1, 32>}, {transform_indices = @transform_3, window_bounds = array<i64: 16, 32>}]} {
    %c0 = arith.constant 0 : index
    %c0_0 = arith.constant 0 : index
    %0 = vector.load %arg1[%c0, %c0_0] : memref<16x32xf32, #tpu.memory_space<vmem>>, vector<16x32xf32>
    %c0_1 = arith.constant 0 : index
    %c0_2 = arith.constant 0 : index
    %1 = vector.load %arg2[%c0_1, %c0_2] : memref<32x32xf32, #tpu.memory_space<vmem>>, vector<32x32xf32>
    %cst = arith.constant dense<0.000000e+00> : vector<16x32xf32>
    %2 = tpu.matmul %0, %1, %cst {dimension_numbers = #tpu.dot_dimension_numbers<[1], [0], [0], [1], [0, 0, 1, 1], [], []>} : vector<16x32xf32>, vector<32x32xf32>, vector<16x32xf32> -> vector<16x32xf32>
    %c0_3 = arith.constant 0 : index
    %c0_4 = arith.constant 0 : index
    %3 = vector.load %arg3[%c0_3, %c0_4] : memref<1x32xf32, #tpu.memory_space<vmem>>, vector<1x32xf32>
    %4 = vector.broadcast %3 : vector<1x32xf32> to vector<16x32xf32>
    %5 = arith.addf %2, %4 : vector<16x32xf32>
    %c0_5 = arith.constant 0 : index
    %c0_6 = arith.constant 0 : index
    %6 = vector.load %arg4[%c0_5, %c0_6] : memref<16x32xf32, #tpu.memory_space<vmem>>, vector<16x32xf32>
    tpu.vector_store %arg4[%c0_5, %c0_6], %5 {strides = array<i32>} : memref<16x32xf32, #tpu.memory_space<vmem>>, vector<16x32xf32>,
    return
  }
  func.func @transform_0(%arg0: i32) -> (i32, i32) {
    %c0_i32 = arith.constant 0 : i32
    %c0_i32_0 = arith.constant 0 : i32
    return %arg0, %c0_i32 : i32, i32
  }
  func.func @transform_1(%arg0: i32) -> (i32, i32) {
    %c0_i32 = arith.constant 0 : i32
    %c0_i32_0 = arith.constant 0 : i32
    %c0_i32_1 = arith.constant 0 : i32
    return %c0_i32, %c0_i32_0 : i32, i32
  }
  func.func @transform_2(%arg0: i32) -> (i32, i32) {
    %c0_i32 = arith.constant 0 : i32
    %c0_i32_0 = arith.constant 0 : i32
    %c0_i32_1 = arith.constant 0 : i32
    return %c0_i32, %c0_i32_0 : i32, i32
  }
  func.func @transform_3(%arg0: i32) -> (i32, i32) {
    %c0_i32 = arith.constant 0 : i32
    %c0_i32_0 = arith.constant 0 : i32
    return %arg0, %c0_i32 : i32, i32
  }
}

</mosaic_0001>

<bundles_post_ra>
// kernel: cross_attention_pallas.4
= control target key start
LH: loop header
LB: loop body
LE: loop exit
PB: predicated region body
PF: predicated region fallthrough
CT: control target
= control target key end

     0   :  { %vm24_vm0 = vcmask 261120   ;;  %s114_s1 = inlined_call_operand.vmem [shape: f32[32,32], index: 1, kind: input, shape index: {}]   ;;  %s115_s2 = inlined_call_operand.vmem [shape: f32[1,32], index: 2, kind: input, shape index: {}]   ;;  %s116_s0 = inlined_call_operand.vmem [shape: f32[16,32], index: 0, kind: input, shape index: {}]   ;;  %s117_s3 = inlined_call_operand.vmem [shape: f32[16,32], index: 3, kind: output, shape index: {}]  }
   0x1   :  { %v19_v0 = vld [vmem:[%s114_s1 + $0x18] sm:$0xff]  ;;  %v18_v1 = vld [vmem:[%s114_s1 + $0x10] sm:$0xff]  ;;  %v17_v2 = vld [vmem:[%s114_s1 + $0x8] sm:$0xff] }
   0x2   :  { %43 = vmatpush.msra.mxu0 %v19_v0  ;;  %62 = vmatpush.msra.mxu1 %v19_v0  ;;  %v16_v3 = vld [vmem:[%s114_s1] sm:$0xff]  ;;  %v15_v5 = vld [vmem:[%s116_s0 + $0x8] sm:$0xff] }
   0x3   :  { %v14_v4 = vld [vmem:[%s116_s0] sm:$0xff] }
   0x4   :  { %44 = vmatpush.msra.mxu0 %v18_v1  ;;  %63 = vmatpush.msra.mxu1 %v18_v1  ;;  %v66_v6 = vld [vmem:[%s115_s2] ss:$0 sm:$0xff] }
   0x6   :  { %45 = vmatpush.msra.mxu0 %v17_v2  ;;  %64 = vmatpush.msra.mxu1 %v17_v2 }
   0x8   :  { %46 = vmatpush.msra.mxu0 %v16_v3  ;;  %65 = vmatpush.msra.mxu1 %v16_v3 }
   0x9   :  { %60 = vmatmul.msk.f32.vlgmr.msra.gmra.mxu0 %vm24_vm0, %v14_v4  ;;  %61 = vmatmul.msk.f32.vlgmr.msra.gmra.mxu1 %vm24_vm0, %v15_v5 }
  0x86   :  { %v48_v7 = vpop.f32.mrf.mxu0  ;;  %v51_v8 = vpop.f32.mrf.mxu1 }
  0x87   :  { %v49_v9 = vadd.f32 %v66_v6, %v48_v7  ;;  %v52_v10 = vadd.f32 %v66_v6, %v51_v8 }
  0x89   :  { %54 = vst.msk [vmem:[%s117_s3] sm:$0xff] %vm24_vm0, %v49_v9 }
  0x8a   :  { %55 = vst.msk [vmem:[%s117_s3 + $0x8] sm:$0xff] %vm24_vm0, %v52_v10 }

// kernel: cross_attention_pallas.5
= control target key start
LH: loop header
LB: loop body
LE: loop exit
PB: predicated region body
PF: predicated region fallthrough
CT: control target
= control target key end

     0   :  { %vm24_vm0 = vcmask 261120   ;;  %vm54_vm1 = vcmask 523264   ;;  %s115_s1 = inlined_call_operand.vmem [shape: f32[32,64], index: 1, kind: input, shape index: {}]   ;;  %s116_s2 = inlined_call_operand.vmem [shape: f32[1,64], index: 2, kind: input, shape index: {}]   ;;  %s117_s0 = inlined_call_operand.vmem [shape: f32[16,32], index: 0, kind: input, shape index: {}]   ;;  %s118_s3 = inlined_call_operand.vmem [shape: f32[16,64], index: 3, kind: output, shape index: {}]  }
   0x1   :  { %v19_v0 = vld [vmem:[%s115_s1 + $0x18] sm:$0xff]  ;;  %v18_v1 = vld [vmem:[%s115_s1 + $0x10] sm:$0xff]  ;;  %v17_v2 = vld [vmem:[%s115_s1 + $0x8] sm:$0xff] }
   0x2   :  { %43 = vmatpush.msra.mxu0 %v19_v0  ;;  %63 = vmatpush.msra.mxu1 %v19_v0  ;;  %v16_v3 = vld [vmem:[%s115_s1] sm:$0xff]  ;;  %v15_v5 = vld [vmem:[%s117_s0 + $0x8] sm:$0xff] }
   0x3   :  { %v14_v4 = vld [vmem:[%s117_s0] sm:$0xff] }
   0x4   :  { %44 = vmatpush.msra.mxu0 %v18_v1  ;;  %64 = vmatpush.msra.mxu1 %v18_v1  ;;  %v67_v6 = vld [vmem:[%s116_s2] ss:$0 sm:$0xff] }
   0x6   :  { %45 = vmatpush.msra.mxu0 %v17_v2  ;;  %65 = vmatpush.msra.mxu1 %v17_v2 }
   0x8   :  { %46 = vmatpush.msra.mxu0 %v16_v3  ;;  %66 = vmatpush.msra.mxu1 %v16_v3 }
   0x9   :  { %61 = vmatmul.msk.f32.vlgmr.msra.gmra.mxu0 %vm24_vm0, %v14_v4  ;;  %62 = vmatmul.msk.f32.vlgmr.msra.gmra.mxu1 %vm24_vm0, %v15_v5 }
  0x86   :  { %v48_v7 = vpop.f32.mrf.mxu0  ;;  %v51_v8 = vpop.f32.mrf.mxu1 }
  0x87   :  { %v49_v9 = vadd.f32 %v67_v6, %v48_v7  ;;  %v52_v10 = vadd.f32 %v67_v6, %v51_v8 }
  0x89   :  { %55 = vst.msk [vmem:[%s118_s3] sm:$0xff] %vm54_vm1, %v49_v9 }
  0x8a   :  { %56 = vst.msk [vmem:[%s118_s3 + $0x8] sm:$0xff] %vm54_vm1, %v52_v10 }

// kernel: cross_attention_pallas.6
= control target key start
LH: loop header
LB: loop body
LE: loop exit
PB: predicated region body
PF: predicated region fallthrough
CT: control target
= control target key end

     0   :  { %s708_s12 = smov 0   ;;  %s710_s13 = smov 0   ;;  %s783_s0 = inlined_call_operand.vmem [shape: f32[2,4,8,8], index: 0, kind: input, shape index: {}]   ;;  %s784_s1 = inlined_call_operand.vmem [shape: f32[2,4,8,8], index: 1, kind: input, shape index: {}]   ;;  %s785_s2 = inlined_call_operand.vmem [shape: f32[2,4,8,8], index: 2, kind: input, shape index: {}]   ;;  %s786_s3 = inlined_call_operand.vmem [shape: f32[2,4,8,8], index: 3, kind: output, shape index: {}]  }
   0x1   :  { %s712_s14 = smov 0   ;;  %s714_s15 = smov 0  }
   0x2   :  { %s716_s16 = smov 0  }
   0x3 LB: > { %s35_s17 = sadd.s32 1, %s675_s14  ;;  %s39_s18 = sadd.s32 1, %s679_s15  ;;  %s683_s16 = sphi %s716_s16, %s13_s16   ;;  %s679_s15 = sphi %s714_s15, %s790_s15   ;;  %s675_s14 = sphi %s712_s14, %s789_s14   ;;  %s671_s13 = sphi %s710_s13, %s788_s13   ;;  %s667_s12 = sphi %s708_s12, %s787_s12  }
   0x4   : > { %p37_p0 = scmp.ge.s32.totalorder %s35_s17, 4  ;;  %p579_p1 = scmp.ge.s32.totalorder %s683_s16, 1 }
   0x5   : > { %p217_p2 = scmp.lt.s32.totalorder %s683_s16, 9 }
   0x6   : > { %s792_s17 = smov (%p37_p0, %s35_s17), 0  ;;  %s794_s18 = smov (!%p37_p0, %s39_s18), %s679_s15 }
   0x7   : > { %p218_p3 = pnand %p579_p1, %p217_p2  ;;  %p41_p4 = scmp.ge.s32.totalorder %s794_s18, 2 }
   0x8   : > { %p275_p5 = scmp.lt.s32.totalorder (!%p218_p3), %s671_s13, 1  ;;  %p277_p6 = scmp.lt.s32.totalorder (!%p218_p3), %s667_s12, 3 }
   0x9   : > { %s796_s18 = smov (%p41_p4, %s794_s18), 0  ;;  %221 = sbr.rel (%p218_p3) target bundleno = 622 (0x26e), region = 32 }
   0xe   : > { %s798_s13 = smov (!%p275_p5, %s671_s13), 1  ;;  %s800_s12 = smov (!%p277_p6, %s667_s12), 3  ;;  %vm326_vm0 = vcmask 64512   ;;  %vm323_vm1 = vcmask 7168   ;;  %v685_v2 = vmov -inf   ;;  %v686_v5 = vmov 0  }
   0xf   : > { %s580_s19 = sshll.u32 %s798_s13, 2  ;;  %324 = vst.msk [vmem:[#allocation2] sm:$0xff] %vm323_vm1, %v685_v2  ;;  %636 = vset.pattern.permute.xlu0 %v686_v5  ;;  %637 = vset.pattern.permute.xlu1 %v686_v5  ;;  %v687_v6 = vmov 0.0  }
  0x10   : > { %s283_s20 = sadd.s32 %s580_s19, %s800_s12  ;;  %638 = vset.pattern.permute.xlu2 %v686_v5  ;;  %325 = vst.msk [vmem:[#allocation3] sm:$0xff] %vm323_vm1, %v687_v6 }
  0x11   : > { %s738_s21 = sshll.u32 %s283_s20, 3  ;;  %327 = vst.msk [vmem:[#allocation4] sm:$0xff] %vm326_vm0, %v687_v6 }
  0x12   : > { %s296_s24 = scalar_lea.vmem %s784_s1, %s738_s21  ;;  %s285_s27 = scalar_lea.vmem %s783_s0, %s738_s21 }
  0x13   : > { %v329_v0 = vld [vmem:[%s296_s24] sm:$0xff]  ;;  %s307_s30 = scalar_lea.vmem %s785_s2, %s738_s21  ;;  %s318_s6 = scalar_lea.vmem %s786_s3, %s738_s21 }
  0x14   : > { %588 = vmatpush.xpose.msk.msra.mxu0 %vm326_vm0, %v329_v0  ;;  %v328_v1 = vld [vmem:[%s285_s27] sm:$0xff] }
  0x15   : > { %v330_v11 = vld [vmem:[%s307_s30] sm:$0xff] }
  0x16   : > { %v358_v7 = vld [vmem:[#allocation2] sm:$0xff]  ;;  %407 = vmatpush.msra.mxu1 %v330_v11 }
  0x17   : > { %589 = vmatmul.msk.f32.vlgmr.msra.gmra.mxu0 %vm326_vm0, %v328_v1  ;;  %v374_v19 = vld [vmem:[#allocation3] sm:$0xff] }
  0x18   : > { %v382_v25 = vld [vmem:[#allocation4] sm:$0xff] }
  0x94   : > { %v355_v3 = vpop.f32.mrf.mxu0 }
  0x95   : > { %v359_v4 = vsel %vm326_vm0, %v355_v3, -inf }
  0x96   : > { %360 = vmax.xlane.f32.xlu0 %v359_v4 }
 0x109   : > { %v361_v8 = vpop.xlane.xlu0 %360 }
 0x10a   : > { %v362_v9 = vmax.f32 %v358_v7, %v361_v8 }
 0x10c   : > { %v363_v10 = vsub.f32 %v358_v7, %v362_v9  ;;  %414 = vst.msk [vmem:[#allocation2] sm:$0xff] %vm323_vm1, %v362_v9  ;;  %368 = vperm.xlu0 %636, %v362_v9  }
 0x10e   : > { %v364_v17 = vmul.f32 1.442695, %v363_v10 }
 0x17e   : > { %v369_v12 = vpop.permute.xlu0 %368 }
 0x17f   : > { %v371_v13 = vsub.f32 %v355_v3, %v369_v12 }
 0x181   : > { %v372_v14 = vmul.f32 1.442695, %v371_v13 }
 0x183   : > { %639 = vpow2.f32 %v372_v14 }
 0x184   : > { %641 = vpow2.f32 %v364_v17 }
 0x189   : > { %v640_v15 = vpop.eup %639 }
 0x18a   : > { %590 = vmatmul.msk.f32.vlgmr.msra.gmra.mxu1 %vm326_vm0, %v640_v15  ;;  %v376_v16 = vsel %vm326_vm0, %v640_v15, 0.0  ;;  %v642_v18 = vpop.eup %641 }
 0x18b   : > { %377 = vadd.xlane.f32.xlu1 %v376_v16  ;;  %v375_v20 = vmul.f32 %v642_v18, %v374_v19 }
 0x1a4   : > { %385 = vperm.xlu1 %637, %v642_v18  }
 0x1fe   : > { %v378_v21 = vpop.xlane.xlu1 %377 }
 0x1ff   : > { %v379_v22 = vadd.f32 %v378_v21, %v375_v20 }
 0x201   : > { %381 = vst.msk [vmem:[#allocation3] sm:$0xff] %vm323_vm1, %v379_v22 }
 0x207   : > { %v409_v28 = vpop.f32.mrf.mxu1 }
 0x208   : > { %v419_v23 = vld [vmem:[#allocation3] sm:$0xff] }
 0x209   : > { %643 = vrcp.f32 %v419_v23 }
 0x20f   : > { %v644_v24 = vpop.eup %643 }
 0x210   : > { %423 = vperm.xlu2 %638, %v644_v24  }
 0x216   : > { %v386_v26 = vpop.permute.xlu1 %385 }
 0x217   : > { %v388_v27 = vmul.f32 %v386_v26, %v382_v25 }
 0x219   : > { %v412_v29 = vadd.f32 %v409_v28, %v388_v27 }
 0x21b   : > { %413 = vst.msk [vmem:[#allocation4] sm:$0xff] %vm326_vm0, %v412_v29 }
 0x222   : > { %v418_v30 = vld [vmem:[#allocation4] sm:$0xff] }
 0x26a   : > { %v424_v31 = vpop.permute.xlu2 %423 }
 0x26b   : > { %v426_v32 = vmul.f32 %v424_v31, %v418_v30 }
 0x26d   : > { %427 = vst.msk [vmem:[%s318_s6] sm:$0xff] %vm326_vm0, %v426_v32 }
 0x26e PF: > { %s13_s16 = sadd.s32 1, %s683_s16   ;;  %s787_s12 = smov %s675_s14 }
 0x26f   : > { %p10_p7 = scmp.ge.s32.totalorder %s13_s16, 10   ;;  %s788_s13 = smov %s679_s15 }
 0x270   : > { %s789_s14 = smov %s792_s17  ;;  %s790_s15 = smov %s796_s18 }
 0x271   :  { %12 = sbr.rel (!%p10_p7) target bundleno = 3 (0x3), region = 76 }

// kernel: cross_attention_pallas.7
= control target key start
LH: loop header
LB: loop body
LE: loop exit
PB: predicated region body
PF: predicated region fallthrough
CT: control target
= control target key end

     0   :  { %s162_s0 = inlined_call_operand.vmem [shape: f32[16,32], index: 0, kind: input, shape index: {}]   ;;  %s163_s1 = inlined_call_operand.vmem [shape: f32[32,32], index: 1, kind: input, shape index: {}]   ;;  %s164_s2 = inlined_call_operand.vmem [shape: f32[1,32], index: 2, kind: input, shape index: {}]   ;;  %s165_s3 = inlined_call_operand.hbm [shape: f32[16,32], index: 3, kind: output, shape index: {}]  }
   0x1   :  { %v20_v0 = vld [vmem:[%s163_s1 + $0x18] sm:$0xff]  ;;  %v19_v1 = vld [vmem:[%s163_s1 + $0x10] sm:$0xff]  ;;  %v18_v2 = vld [vmem:[%s163_s1 + $0x8] sm:$0xff] }
   0x2   :  { %44 = vmatpush.msra.mxu0 %v20_v0  ;;  %77 = vmatpush.msra.mxu1 %v20_v0 }
   0x3   :  { %8 = vsyncpa [#allocation3], 0  ;;  %v17_v3 = vld [vmem:[%s163_s1] sm:$0xff]  ;;  %vm25_vm0 = vcmask 261120   ;;  %v16_v5 = vld [vmem:[%s162_s0 + $0x8] sm:$0xff]  ;;  %s111_s1 = smov [#allocation2]  }
   0x4   :  { %45 = vmatpush.msra.mxu0 %v19_v1  ;;  %78 = vmatpush.msra.mxu1 %v19_v1  ;;  %v15_v4 = vld [vmem:[%s162_s0] sm:$0xff]  ;;  %s61_s26 = sshll.u32 %s111_s1, 4  ;;  %s63_s29 = sshll.u32 %s165_s3, 4  ;;  %s62_s26 = int_to_ptr.vmem [resolvable:$true] %s61_s26  ;;  %s64_s29 = int_to_ptr.hbm [resolvable:$true] %s63_s29 }
   0x5   :  { %v84_v6 = vld [vmem:[%s164_s2] ss:$0 sm:$0xff]  ;;  %s112_s0 = smov 128   ;;  %s113_s30 = smov 8  }
   0x6   :  { %46 = vmatpush.msra.mxu0 %v18_v2  ;;  %79 = vmatpush.msra.mxu1 %v18_v2 }
   0x8   :  { %47 = vmatpush.msra.mxu0 %v17_v3  ;;  %80 = vmatpush.msra.mxu1 %v17_v3 }
   0x9   :  { %75 = vmatmul.msk.f32.vlgmr.msra.gmra.mxu0 %vm25_vm0, %v15_v4  ;;  %76 = vmatmul.msk.f32.vlgmr.msra.gmra.mxu1 %vm25_vm0, %v16_v5 }
  0x86   :  { %v49_v7 = vpop.f32.mrf.mxu0  ;;  %v52_v8 = vpop.f32.mrf.mxu1 }
  0x87   :  { %v50_v9 = vadd.f32 %v84_v6, %v49_v7  ;;  %v53_v10 = vadd.f32 %v84_v6, %v52_v8 }
  0x89   :  { %55 = vst.msk [vmem:[#allocation2] sm:$0xff] %vm25_vm0, %v50_v9 }
  0x8a   :  { %56 = vst.msk [vmem:[#allocation2 + $0x8] sm:$0xff] %vm25_vm0, %v53_v10 }
  0x8b   :  { %69 = dma.vmem_to_hbm [thread:$0]  %s62_s26, 256, %s64_s29, [#allocation3], %s112_s0, %s112_s0, %s113_s30  }
  0x8c   :  { %109 = dma.done.wait [#allocation3], 256  }
  0x8d   :  { %110 = vsyncadd [#allocation3], 4294967040 }
  0x8e   :  { %74 = vsyncpa [#allocation3], 1 }

</bundles_post_ra>
